<compile_context>
chip_gen: v7x
topology: tpu7x:2x2x1
jax: 0.10.0
libtpu: 0.0.40
codegen_flags: <defaults>
</compile_context>

<pallas_src>
import math

import jax
import jax.numpy as jnp
from jax.experimental import pallas as pl
from jax.experimental.pallas import tpu as pltpu

# ---------------- model hyper-params (small, ViT-style) ---------------------
B = 2            # batch
N = 8            # sequence length (tokens)
DIM = 128        # embedding dim      (lane-dense: multiple of 128)
HIDDEN = 256     # MLP hidden dim     (lane-dense: multiple of 128)
LN_EPS = 1e-5

_INV_SQRT2 = 0.7071067811865476


# ---------------- exact GELU (erf via polynomial) ----------------------------
def _erf(z):
    # Abramowitz & Stegun 7.1.26 polynomial (max abs err ~1.5e-7).
    # Kept erf-exact to match torch.nn.GELU() default (not tanh approx).
    a1, a2, a3, a4, a5 = (0.254829592, -0.284496736, 1.421413741,
                          -1.453152027, 1.061405429)
    p = 0.3275911
    sign = jnp.where(z >= 0.0, 1.0, -1.0)
    za = jnp.abs(z)
    # EUP approx reciprocal instead of an f32 divide (VPU Newton steps saved).
    t = pl.reciprocal(1.0 + p * za, approx=True)
    poly = ((((a5 * t + a4) * t + a3) * t + a2) * t + a1) * t
    return sign * (1.0 - poly * jnp.exp(-za * za))     # exp -> EUP slot


def _gelu_exact(x):
    # Matches torch.nn.GELU() default (erf-based).
    return 0.5 * x * (1.0 + _erf(x * _INV_SQRT2))


# ---------------- Pallas kernel ----------------------------------------------
def _ffn_kernel(x_ref, w1_ref, w2_ref, bias_ref, o_ref):
    x = x_ref[...]                                     # (B*N, DIM) f32

    # ---- LayerNorm statistics (affine already folded into W1'/b1') ----
    mean = jnp.mean(x, axis=-1, keepdims=True)
    xc = x - mean
    var = jnp.mean(xc * xc, axis=-1, keepdims=True)
    xn = xc * jax.lax.rsqrt(var + LN_EPS)              # rsqrt -> EUP slot

    # Packed biases: [b1' | b2] along lanes (both slices lane-tile aligned).
    b1 = bias_ref[:, :HIDDEN]                          # (1, HIDDEN) f32
    b2 = bias_ref[:, HIDDEN:]                          # (1, DIM)    f32

    # ---- Linear(dim -> hidden) with folded LN affine, + exact GELU ----
    # bf16 MXU inputs, f32 accumulation.
    h = jnp.dot(xn.astype(jnp.bfloat16), w1_ref[...],
                preferred_element_type=jnp.float32) + b1
    h = _gelu_exact(h)

    # Dropout(p=0.0) is the identity — nothing to do.

    # ---- Linear(hidden -> dim) ----
    y = jnp.dot(h.astype(jnp.bfloat16), w2_ref[...],
                preferred_element_type=jnp.float32) + b2
    o_ref[...] = y                                     # unmasked lane-dense store


def feed_forward(x, ln_w, ln_b, w1_t, b1, w2_t, b2):
    """x: (B, N, DIM) float32 -> (B, N, DIM) float32."""
    b_, n_, d_ = x.shape
    rows = b_ * n_
    x2 = x.reshape(rows, d_)          # free contiguous reshape outside kernel

    # Fold the LN affine into the first Linear (done once, outside the kernel).
    w1p = (ln_w[:, None] * w1_t).astype(jnp.bfloat16)       # (DIM, HIDDEN)
    b1p = ln_b @ w1_t + b1                                   # (HIDDEN,)
    w2p = w2_t.astype(jnp.bfloat16)                          # (HIDDEN, DIM)
    biases = jnp.concatenate([b1p, b2]).reshape(1, HIDDEN + d_)  # (1, 384) f32

    # Scaling note (not active at this size):
    #   * if B*N grows, add a leading "parallel" rows axis with an M tile of
    #     256 (v6e/v7x) or 128 (v5e) and keep the weight index_maps constant
    #     so W1'/W2 stay VMEM-resident across steps (no re-DMA per tile).
    #   * on v7x only split rows across the two TensorCores once there are
    #     >= ~512 rows; earlier it just duplicates weight DMA into both cores.
    #   * at real ViT dims (DIM=768, HIDDEN=3072) give the grid-invariant
    #     weight BlockSpecs pipeline_mode=pl.Buffered(1) and/or raise
    #     vmem_limit_bytes so f32/bf16 weights fit v7x's 64 MiB VMEM.
    grid_spec = pltpu.PrefetchScalarGridSpec(
        num_scalar_prefetch=0,
        grid=(1,),                    # single invocation: whole problem fits
        in_specs=[
            pl.BlockSpec((rows, d_), lambda i: (0, 0)),        # x (B*N, DIM)
            pl.BlockSpec((d_, HIDDEN), lambda i: (0, 0)),      # W1' (bf16)
            pl.BlockSpec((HIDDEN, d_), lambda i: (0, 0)),      # W2^T (bf16)
            pl.BlockSpec((1, HIDDEN + d_), lambda i: (0, 0)),  # [b1' | b2]
        ],
        out_specs=pl.BlockSpec((rows, d_), lambda i: (0, 0)),
    )
    y2 = pl.pallas_call(
        _ffn_kernel,
        out_shape=jax.ShapeDtypeStruct((rows, d_), jnp.float32),
        grid_spec=grid_spec,
        compiler_params=pltpu.CompilerParams(
            dimension_semantics=("arbitrary",)),
    )(x2, w1p, w2p, biases)
    return y2.reshape(b_, n_, d_)


# ---------------- glue: parameter construction (torch-style init) -----------
def make_params(key):
    k1, k2, k3, k4, k5, k6 = jax.random.split(key, 6)
    ln_w = 1.0 + 0.1 * jax.random.normal(k1, (DIM,), dtype=jnp.float32)
    ln_b = 0.1 * jax.random.normal(k2, (DIM,), dtype=jnp.float32)
    # nn.Linear(dim, hidden): weight (hidden, dim), bias (hidden); pass W^T
    lim1 = 1.0 / math.sqrt(DIM)
    w1 = jax.random.uniform(k3, (HIDDEN, DIM), jnp.float32, -lim1, lim1)
    b1 = jax.random.uniform(k4, (HIDDEN,), jnp.float32, -lim1, lim1)
    # nn.Linear(hidden, dim): weight (dim, hidden), bias (dim); pass W^T
    lim2 = 1.0 / math.sqrt(HIDDEN)
    w2 = jax.random.uniform(k5, (DIM, HIDDEN), jnp.float32, -lim2, lim2)
    b2 = jax.random.uniform(k6, (DIM,), jnp.float32, -lim2, lim2)
    return ln_w, ln_b, w1.T, b1, w2.T, b2


# ---------------- pure-JAX reference (mirrors the torch forward) ------------
def reference_forward(x, ln_w, ln_b, w1_t, b1, w2_t, b2):
    mean = x.mean(-1, keepdims=True)
    var = ((x - mean) ** 2).mean(-1, keepdims=True)
    xn = (x - mean) / jnp.sqrt(var + LN_EPS) * ln_w + ln_b
    h = jnp.dot(xn, w1_t, precision=jax.lax.Precision.HIGHEST) + b1
    h = jax.nn.gelu(h, approximate=False)   # nn.GELU() default (exact erf)
    y = jnp.dot(h, w2_t, precision=jax.lax.Precision.HIGHEST) + b2
    return y                                 # dropout p=0.0 -> identity


# ---------------- main -------------------------------------------------------
if __name__ == "__main__":
    key = jax.random.PRNGKey(0)
    kx, kp = jax.random.split(key)
    x = jax.random.normal(kx, (B, N, DIM), dtype=jnp.float32)
    params = make_params(kp)

    out = feed_forward(x, *params)
    out = jax.block_until_ready(out)

    ref = reference_forward(x, *params)
    assert out.shape == (B, N, DIM)
    max_diff = jnp.max(jnp.abs(out - ref))
    # Tolerance accounts for bf16 MXU operands (f32 accumulate) vs the
    # Precision.HIGHEST f32 reference: observed error is ~1e-3 level.
    assert jnp.allclose(out, ref, rtol=1e-2, atol=1e-2), (
        f"max abs diff {max_diff}")

    print("KERNEL_OK")
</pallas_src>

<mosaic_0001>
module attributes {stable_mosaic.version = 11 : i64} {
  func.func @_ffn_kernel(%arg0: i32, %arg1: memref<16x128xf32, #tpu.memory_space<vmem>>, %arg2: memref<128x256xbf16, #tpu.memory_space<vmem>>, %arg3: memref<256x128xbf16, #tpu.memory_space<vmem>>, %arg4: memref<1x384xf32, #tpu.memory_space<vmem>>, %arg5: memref<16x128xf32, #tpu.memory_space<vmem>>) attributes {dimension_semantics = [#tpu.dimension_semantics<arbitrary>], iteration_bounds = array<i64: 1>, scalar_prefetch = 0 : i64, scratch_operands = 0 : i64, tpu.core_type = #tpu.core_type<tc>, window_params = [{pipeline_mode = #tpu.pipeline_mode<synchronous>, transform_indices = @transform_0, window_bounds = array<i64: 16, 128>}, {pipeline_mode = #tpu.pipeline_mode<synchronous>, transform_indices = @transform_1, window_bounds = array<i64: 128, 256>}, {pipeline_mode = #tpu.pipeline_mode<synchronous>, transform_indices = @transform_2, window_bounds = array<i64: 256, 128>}, {pipeline_mode = #tpu.pipeline_mode<synchronous>, transform_indices = @transform_3, window_bounds = array<i64: 1, 384>}, {pipeline_mode = #tpu.pipeline_mode<synchronous>, transform_indices = @transform_4, window_bounds = array<i64: 16, 128>}]} {
    %c0 = arith.constant 0 : index
    %c0_0 = arith.constant 0 : index
    %0 = vector.load %arg1[%c0, %c0_0] : memref<16x128xf32, #tpu.memory_space<vmem>>, vector<16x128xf32>
    %cst = arith.constant dense<0.000000e+00> : vector<16xf32>
    %1 = vector.multi_reduction <add>, %0, %cst [1] : vector<16x128xf32> to vector<16xf32>
    %2 = vector.shape_cast %1 : vector<16xf32> to vector<16x1xf32>
    %cst_1 = arith.constant 1.280000e+02 : f32
    %3 = vector.broadcast %cst_1 : f32 to vector<16x1xf32>
    %4 = arith.divf %2, %3 : vector<16x1xf32>
    %5 = vector.broadcast %4 : vector<16x1xf32> to vector<16x128xf32>
    %6 = arith.subf %0, %5 : vector<16x128xf32>
    %7 = arith.mulf %6, %6 : vector<16x128xf32>
    %cst_2 = arith.constant dense<0.000000e+00> : vector<16xf32>
    %8 = vector.multi_reduction <add>, %7, %cst_2 [1] : vector<16x128xf32> to vector<16xf32>
    %9 = vector.shape_cast %8 : vector<16xf32> to vector<16x1xf32>
    %cst_3 = arith.constant 1.280000e+02 : f32
    %10 = vector.broadcast %cst_3 : f32 to vector<16x1xf32>
    %11 = arith.divf %9, %10 : vector<16x1xf32>
    %cst_4 = arith.constant 9.99999974E-6 : f32
    %12 = vector.broadcast %cst_4 : f32 to vector<16x1xf32>
    %13 = arith.addf %11, %12 : vector<16x1xf32>
    %14 = math.rsqrt %13 : vector<16x1xf32>
    %15 = vector.broadcast %14 : vector<16x1xf32> to vector<16x128xf32>
    %16 = arith.mulf %6, %15 : vector<16x128xf32>
    %c0_5 = arith.constant 0 : index
    %c0_6 = arith.constant 0 : index
    %17 = vector.load %arg4[%c0_5, %c0_6] : memref<1x384xf32, #tpu.memory_space<vmem>>, vector<1x256xf32>
    %c0_7 = arith.constant 0 : index
    %c256 = arith.constant 256 : index
    %18 = vector.load %arg4[%c0_7, %c256] : memref<1x384xf32, #tpu.memory_space<vmem>>, vector<1x128xf32>
    %19 = arith.truncf %16 : vector<16x128xf32> to vector<16x128xbf16>
    %c0_8 = arith.constant 0 : index
    %c0_9 = arith.constant 0 : index
    %20 = vector.load %arg2[%c0_8, %c0_9] : memref<128x256xbf16, #tpu.memory_space<vmem>>, vector<128x256xbf16>
    %cst_10 = arith.constant dense<0.000000e+00> : vector<16x256xf32>
    %21 = tpu.matmul %19, %20, %cst_10 {dimension_numbers = #tpu.dot_dimension_numbers<[1], [0], [0], [1], [0, 0, 1, 1], [], []>} : vector<16x128xbf16>, vector<128x256xbf16>, vector<16x256xf32> -> vector<16x256xf32>
    %22 = vector.broadcast %17 : vector<1x256xf32> to vector<16x256xf32>
    %23 = arith.addf %21, %22 : vector<16x256xf32>
    %cst_11 = arith.constant 5.000000e-01 : f32
    %24 = vector.broadcast %cst_11 : f32 to vector<16x256xf32>
    %25 = arith.mulf %24, %23 : vector<16x256xf32>
    %cst_12 = arith.constant 0.707106769 : f32
    %26 = vector.broadcast %cst_12 : f32 to vector<16x256xf32>
    %27 = arith.mulf %23, %26 : vector<16x256xf32>
    %cst_13 = arith.constant 0.000000e+00 : f32
    %28 = vector.broadcast %cst_13 : f32 to vector<16x256xf32>
    %29 = arith.cmpf oge, %27, %28 : vector<16x256xf32>
    %cst_14 = arith.constant 1.000000e+00 : f32
    %cst_15 = arith.constant -1.000000e+00 : f32
    %30 = vector.broadcast %cst_14 : f32 to vector<16x256xf32>
    %31 = vector.broadcast %cst_15 : f32 to vector<16x256xf32>
    %32 = arith.select %29, %30, %31 : vector<16x256xi1>, vector<16x256xf32>
    %33 = math.absf %27 : vector<16x256xf32>
    %cst_16 = arith.constant 0.327591091 : f32
    %34 = vector.broadcast %cst_16 : f32 to vector<16x256xf32>
    %35 = arith.mulf %34, %33 : vector<16x256xf32>
    %cst_17 = arith.constant 1.000000e+00 : f32
    %36 = vector.broadcast %cst_17 : f32 to vector<16x256xf32>
    %37 = arith.addf %36, %35 : vector<16x256xf32>
    %38 = tpu.reciprocal %37 {approx = true} : vector<16x256xf32> -> vector<16x256xf32>
    %cst_18 = arith.constant 1.06140542 : f32
    %39 = vector.broadcast %cst_18 : f32 to vector<16x256xf32>
    %40 = arith.mulf %39, %38 : vector<16x256xf32>
    %cst_19 = arith.constant -1.45315206 : f32
    %41 = vector.broadcast %cst_19 : f32 to vector<16x256xf32>
    %42 = arith.addf %40, %41 : vector<16x256xf32>
    %43 = arith.mulf %42, %38 : vector<16x256xf32>
    %cst_20 = arith.constant 1.42141378 : f32
    %44 = vector.broadcast %cst_20 : f32 to vector<16x256xf32>
    %45 = arith.addf %43, %44 : vector<16x256xf32>
    %46 = arith.mulf %45, %38 : vector<16x256xf32>
    %cst_21 = arith.constant -0.284496725 : f32
    %47 = vector.broadcast %cst_21 : f32 to vector<16x256xf32>
    %48 = arith.addf %46, %47 : vector<16x256xf32>
    %49 = arith.mulf %48, %38 : vector<16x256xf32>
    %cst_22 = arith.constant 0.254829586 : f32
    %50 = vector.broadcast %cst_22 : f32 to vector<16x256xf32>
    %51 = arith.addf %49, %50 : vector<16x256xf32>
    %52 = arith.mulf %51, %38 : vector<16x256xf32>
    %cst_23 = arith.constant 0.000000e+00 : f32
    %53 = vector.broadcast %cst_23 : f32 to vector<16x256xf32>
    %54 = arith.subf %53, %33 : vector<16x256xf32>
    %55 = arith.mulf %54, %33 : vector<16x256xf32>
    %56 = math.exp %55 : vector<16x256xf32>
    %57 = arith.mulf %52, %56 : vector<16x256xf32>
    %cst_24 = arith.constant 1.000000e+00 : f32
    %58 = vector.broadcast %cst_24 : f32 to vector<16x256xf32>
    %59 = arith.subf %58, %57 : vector<16x256xf32>
    %60 = arith.mulf %32, %59 : vector<16x256xf32>
    %cst_25 = arith.constant 1.000000e+00 : f32
    %61 = vector.broadcast %cst_25 : f32 to vector<16x256xf32>
    %62 = arith.addf %61, %60 : vector<16x256xf32>
    %63 = arith.mulf %25, %62 : vector<16x256xf32>
    %64 = arith.truncf %63 : vector<16x256xf32> to vector<16x256xbf16>
    %c0_26 = arith.constant 0 : index
    %c0_27 = arith.constant 0 : index
    %65 = vector.load %arg3[%c0_26, %c0_27] : memref<256x128xbf16, #tpu.memory_space<vmem>>, vector<256x128xbf16>
    %cst_28 = arith.constant dense<0.000000e+00> : vector<16x128xf32>
    %66 = tpu.matmul %64, %65, %cst_28 {dimension_numbers = #tpu.dot_dimension_numbers<[1], [0], [0], [1], [0, 0, 1, 1], [], []>} : vector<16x256xbf16>, vector<256x128xbf16>, vector<16x128xf32> -> vector<16x128xf32>
    %67 = vector.broadcast %18 : vector<1x128xf32> to vector<16x128xf32>
    %68 = arith.addf %66, %67 : vector<16x128xf32>
    %c0_29 = arith.constant 0 : index
    %c0_30 = arith.constant 0 : index
    %69 = vector.load %arg5[%c0_29, %c0_30] : memref<16x128xf32, #tpu.memory_space<vmem>>, vector<16x128xf32>
    tpu.vector_store %arg5[%c0_29, %c0_30], %68 {strides = array<i32>} : memref<16x128xf32, #tpu.memory_space<vmem>>, vector<16x128xf32>,
    return
  }
  func.func @transform_0(%arg0: i32) -> (i32, i32) {
    %c0_i32 = arith.constant 0 : i32
    %c0_i32_0 = arith.constant 0 : i32
    %c0_i32_1 = arith.constant 0 : i32
    return %c0_i32, %c0_i32_0 : i32, i32
  }
  func.func @transform_1(%arg0: i32) -> (i32, i32) {
    %c0_i32 = arith.constant 0 : i32
    %c0_i32_0 = arith.constant 0 : i32
    %c0_i32_1 = arith.constant 0 : i32
    return %c0_i32, %c0_i32_0 : i32, i32
  }
  func.func @transform_2(%arg0: i32) -> (i32, i32) {
    %c0_i32 = arith.constant 0 : i32
    %c0_i32_0 = arith.constant 0 : i32
    %c0_i32_1 = arith.constant 0 : i32
    return %c0_i32, %c0_i32_0 : i32, i32
  }
  func.func @transform_3(%arg0: i32) -> (i32, i32) {
    %c0_i32 = arith.constant 0 : i32
    %c0_i32_0 = arith.constant 0 : i32
    %c0_i32_1 = arith.constant 0 : i32
    return %c0_i32, %c0_i32_0 : i32, i32
  }
  func.func @transform_4(%arg0: i32) -> (i32, i32) {
    %c0_i32 = arith.constant 0 : i32
    %c0_i32_0 = arith.constant 0 : i32
    %c0_i32_1 = arith.constant 0 : i32
    return %c0_i32, %c0_i32_0 : i32, i32
  }
}

</mosaic_0001>

<bundles_post_ra>
// kernel: tpu_custom_call.1
= control target key start
LH: loop header
LB: loop body
LE: loop exit
PB: predicated region body
PF: predicated region fallthrough
CT: control target
= control target key end

     0   :  { %9 = vsyncpa [#allocation3], 0  ;;  %s895_s0 = inlined_call_operand.hbm [shape: f32[16,128], index: 0, kind: input, shape index: {}]   ;;  %s896_s1 = inlined_call_operand.hbm [shape: bf16[128,256], index: 1, kind: input, shape index: {}]   ;;  %s897_s2 = inlined_call_operand.hbm [shape: bf16[256,128], index: 2, kind: input, shape index: {}]   ;;  %s898_s3 = inlined_call_operand.vmem [shape: f32[1,384], index: 3, kind: input, shape index: {}]   ;;  %s899_s4 = inlined_call_operand.hbm [shape: f32[16,128], index: 4, kind: output, shape index: {}]  }
   0x1   :  { %10 = vsyncpa [#allocation6], 0 }
   0x2   :  { %11 = vsyncpa [#allocation4], 0  ;;  %s758_s15 = smov [#allocation5]   ;;  %s759_s17 = smov [#allocation2]  }
   0x3   :  { %s29_s16 = sshll.u32 %s758_s15, 4  ;;  %s17_s18 = sshll.u32 %s759_s17, 4  ;;  %s30_s16 = int_to_ptr.vmem [resolvable:$true] %s29_s16  ;;  %s793_s18 = int_to_ptr.vmem [resolvable:$true] %s17_s18 }
   0x4   :  { %s664_s21 = scalar_lea.hbm %s896_s1, 2048 }
   0x5   :  { %p665_p0 = scmp.ne.s32.totalorder %s896_s1, %s664_s21  ;;  %p668_p1 = scmp.lt.u32.totalorder %s664_s21, %s896_s1 }
   0x7   :  { %p670_p2 = pnand %p668_p1, %p665_p0 }
   0x9   :  { %673 = shalt.err (!%p670_p2)
}
   0xa   :  { %s674_s26 = scalar_lea.vmem %s30_s16, 2048  ;;  %p679_p4 = scmp.lt.s32.totalorder %s30_s16, %s30_s16 }
   0xb   :  { %p675_p3 = scmp.ne.s32.totalorder %s30_s16, %s674_s26  ;;  %p680_p5 = scmp.lt.s32.totalorder %s674_s26, %s674_s26 }
   0xd   :  { %p681_p6 = por %p680_p5, %p679_p4 }
   0xf   :  { %p682_p7 = pnand %p681_p6, %p675_p3 }
  0x11   :  { %685 = shalt.err (!%p682_p7)
}
  0x12   :  { %s760_s27 = smov 128   ;;  %s761_s28 = smov 8  }
  0x13   :  { %35 = dma.hbm_to_vmem [thread:$0]  %s896_s1, 2048, %s30_s16, [#allocation6], %s760_s27, %s760_s27, %s761_s28  }
  0x14   :  { %s686_s7 = scalar_lea.hbm %s895_s0, 256 }
  0x15   :  { %p687_p8 = scmp.ne.s32.totalorder %s895_s0, %s686_s7  ;;  %p690_p9 = scmp.lt.u32.totalorder %s686_s7, %s895_s0 }
  0x17   :  { %p692_p10 = pnand %p690_p9, %p687_p8 }
  0x19   :  { %695 = shalt.err (!%p692_p10)
}
  0x1a   :  { %s696_s12 = scalar_lea.vmem %s793_s18, 256  ;;  %p701_p12 = scmp.lt.s32.totalorder %s793_s18, %s793_s18 }
  0x1b   :  { %p697_p11 = scmp.ne.s32.totalorder %s793_s18, %s696_s12  ;;  %p702_p13 = scmp.lt.s32.totalorder %s696_s12, %s696_s12 }
  0x1d   :  { %p703_p0 = por %p702_p13, %p701_p12 }
  0x1f   :  { %p704_p1 = pnand %p703_p0, %p697_p11 }
  0x21   :  { %707 = shalt.err (!%p704_p1)
}
  0x22   :  { %23 = dma.hbm_to_vmem [thread:$0]  %s895_s0, 256, %s793_s18, [#allocation3], %s760_s27, %s760_s27, %s761_s28  }
  0x23   :  { %s762_s14 = smov [#allocation7]   ;;  %s708_s19 = scalar_lea.hbm %s897_s2, 2048 }
  0x24   :  { %s41_s15 = sshll.u32 %s762_s14, 4  ;;  %p709_p2 = scmp.ne.s32.totalorder %s897_s2, %s708_s19  ;;  %s42_s15 = int_to_ptr.vmem [resolvable:$true] %s41_s15 }
  0x25   :  { %p712_p3 = scmp.lt.u32.totalorder %s708_s19, %s897_s2 }
  0x27   :  { %p714_p4 = pnand %p712_p3, %p709_p2 }
  0x29   :  { %717 = shalt.err (!%p714_p4)
}
  0x2a   :  { %s718_s24 = scalar_lea.vmem %s42_s15, 2048  ;;  %p723_p6 = scmp.lt.s32.totalorder %s42_s15, %s42_s15 }
  0x2b   :  { %p719_p5 = scmp.ne.s32.totalorder %s42_s15, %s718_s24  ;;  %p724_p7 = scmp.lt.s32.totalorder %s718_s24, %s718_s24 }
  0x2d   :  { %p725_p8 = por %p724_p7, %p723_p6 }
  0x2f   :  { %p726_p9 = pnand %p725_p8, %p719_p5 }
  0x31   :  { %729 = shalt.err (!%p726_p9)
}
  0x32   :  { %s763_s0 = smov 64   ;;  %s764_s18 = smov 4  }
  0x33   :  { %47 = dma.hbm_to_vmem [thread:$0]  %s897_s2, 2048, %s42_s15, [#allocation6], %s763_s0, %s763_s0, %s764_s18  }
  0x34   :  { %752 = dma.done.wait [#allocation3], 256  }
  0x35   :  { %753 = vsyncadd [#allocation3], 4294967040 }
  0x36   :  { %754 = dma.done.wait [#allocation6], 4096  }
  0x37   :  { %755 = vsyncadd [#allocation6], 4294963200  ;;  %v60_v0 = vld [vmem:[#allocation2] sm:$0xff]  ;;  %v61_v1 = vld [vmem:[#allocation2 + $0x8] sm:$0xff]  ;;  %v765_v23 = vmov 0   ;;  %v105_v54 = vlaneseq  ;;  %s767_s6 = smov [#allocation8]  }
  0x38   :  { %62 = vadd.xlane.f32.xlu0 %v60_v0  ;;  %v604_v2 = vld [vmem:[#allocation5 + $0x4] ss:$8 sps:$4 sm:$0xff]   ;;  %v606_v3 = vld [vmem:[#allocation5] ss:$8 sps:$4 sm:$0xff]   ;;  %v607_v4 = vld [vmem:[#allocation5 + $0x14] ss:$8 sps:$4 sm:$0xff]   ;;  %227 = vmatprep.mubr.bf16.mxu0 %v765_v23 }
  0x39   :  { %195 = vmatprep.subr.bf16.mxu0 %v604_v2  ;;  %v609_v5 = vld [vmem:[#allocation5 + $0x10] ss:$8 sps:$4 sm:$0xff]   ;;  %v610_v6 = vld [vmem:[#allocation5 + $0x24] ss:$8 sps:$4 sm:$0xff]   ;;  %v612_v15 = vld [vmem:[#allocation5 + $0x20] ss:$8 sps:$4 sm:$0xff]  }
  0x3a   :  { %196 = vmatpush1.bf16.msra.mxu0 %v606_v3  ;;  %v613_v16 = vld [vmem:[#allocation5 + $0x34] ss:$8 sps:$4 sm:$0xff]   ;;  %v615_v17 = vld [vmem:[#allocation5 + $0x30] ss:$8 sps:$4 sm:$0xff]   ;;  %v616_v18 = vld [vmem:[#allocation5 + $0x44] ss:$8 sps:$4 sm:$0xff]  }
  0x3b   :  { %197 = vmatprep.subr.bf16.mxu0 %v607_v4  ;;  %v618_v19 = vld [vmem:[#allocation5 + $0x40] ss:$8 sps:$4 sm:$0xff]   ;;  %v619_v20 = vld [vmem:[#allocation5 + $0x54] ss:$8 sps:$4 sm:$0xff]   ;;  %v621_v21 = vld [vmem:[#allocation5 + $0x50] ss:$8 sps:$4 sm:$0xff]  }
  0x3c   :  { %64 = vadd.xlane.f32.xlu0 %v61_v1  ;;  %v622_v22 = vld [vmem:[#allocation5 + $0x64] ss:$8 sps:$4 sm:$0xff]   ;;  %v624_v24 = vld [vmem:[#allocation5 + $0x60] ss:$8 sps:$4 sm:$0xff]   ;;  %v625_v25 = vld [vmem:[#allocation5 + $0x74] ss:$8 sps:$4 sm:$0xff]  }
  0x3d   :  { %v627_v26 = vld [vmem:[#allocation5 + $0x70] ss:$8 sps:$4 sm:$0xff]   ;;  %v628_v38 = vld [vmem:[#allocation7 + $0x40] sm:$0xff]   ;;  %v630_v40 = vld [vmem:[#allocation7 + $0x48] sm:$0xff]   ;;  %v106_v55 = vshrl.u32 %v105_v54, 7  ;;  %s526_s7 = sshll.u32 %s767_s6, 4  ;;  %s527_s7 = int_to_ptr.vmem [resolvable:$true] %s526_s7 }
  0x3e   :  { %198 = vmatpush1.bf16.msra.mxu0 %v609_v5  ;;  %v629_v39 = vld [vmem:[#allocation7] sm:$0xff]   ;;  %572 = vmatprep.subr.bf16.mxu1 %v628_v38  ;;  %v631_v41 = vld [vmem:[#allocation7 + $0x8] sm:$0xff]   ;;  %v632_v42 = vld [vmem:[#allocation7 + $0x50] sm:$0xff]   ;;  %s730_s8 = scalar_lea.vmem %s527_s7, 256  ;;  %p735_p11 = scmp.lt.s32.totalorder %s527_s7, %s527_s7 }
  0x3f   :  { %199 = vmatprep.subr.bf16.mxu0 %v610_v6  ;;  %573 = vmatpush3.bf16.msra.mxu1 %v629_v39  ;;  %v633_v43 = vld [vmem:[#allocation7 + $0x10] sm:$0xff]   ;;  %v634_v44 = vld [vmem:[#allocation7 + $0x58] sm:$0xff]   ;;  %v636_v46 = vld [vmem:[#allocation7 + $0x60] sm:$0xff]   ;;  %v107_v56 = vsub.s32 0, %v106_v55  ;;  %v111_v58 = vsub.s32 1, %v106_v55  ;;  %p731_p10 = scmp.ne.s32.totalorder %s527_s7, %s730_s8  ;;  %p736_p12 = scmp.lt.s32.totalorder %s730_s8, %s730_s8 }
  0x40   :  { %574 = vmatprep.subr.bf16.mxu1 %v630_v40  ;;  %v635_v45 = vld [vmem:[#allocation7 + $0x18] sm:$0xff]   ;;  %v637_v47 = vld [vmem:[#allocation7 + $0x20] sm:$0xff]   ;;  %v638_v48 = vld [vmem:[#allocation7 + $0x68] sm:$0xff]  }
  0x41   :  { %v639_v49 = vld [vmem:[#allocation7 + $0x28] sm:$0xff]   ;;  %v640_v50 = vld [vmem:[#allocation7 + $0x70] sm:$0xff]   ;;  %v642_v52 = vld [vmem:[#allocation7 + $0x78] sm:$0xff]   ;;  %p737_p13 = por %p736_p12, %p735_p11 }
  0x42   :  { %200 = vmatpush1.bf16.msra.mxu0 %v612_v15  ;;  %v641_v51 = vld [vmem:[#allocation7 + $0x30] sm:$0xff]   ;;  %v643_v53 = vld [vmem:[#allocation7 + $0x38] sm:$0xff]  }
  0x43   :  { %201 = vmatprep.subr.bf16.mxu0 %v613_v16  ;;  %575 = vmatpush3.bf16.msra.mxu1 %v631_v41  ;;  %v85_v57 = vld [vmem:[%s898_s3] sm:$0x3]  ;;  %p738_p0 = pnand %p737_p13, %p731_p10 }
  0x44   :  { %576 = vmatprep.subr.bf16.mxu1 %v632_v42  ;;  %v108_v59 = vrot.slane %v85_v57, %v107_v56  ;;  %v112_v60 = vrot.slane %v85_v57, %v111_v58 }
  0x46   :  { %202 = vmatpush1.bf16.msra.mxu0 %v615_v17 }
  0x47   :  { %203 = vmatprep.subr.bf16.mxu0 %v616_v18  ;;  %577 = vmatpush3.bf16.msra.mxu1 %v633_v43 }
  0x48   :  { %578 = vmatprep.subr.bf16.mxu1 %v634_v44 }
  0x4a   :  { %204 = vmatpush1.bf16.msra.mxu0 %v618_v19 }
  0x4b   :  { %205 = vmatprep.subr.bf16.mxu0 %v619_v20  ;;  %579 = vmatpush3.bf16.msra.mxu1 %v635_v45 }
  0x4c   :  { %580 = vmatprep.subr.bf16.mxu1 %v636_v46 }
  0x4e   :  { %206 = vmatpush1.bf16.msra.mxu0 %v621_v21 }
  0x4f   :  { %207 = vmatprep.subr.bf16.mxu0 %v622_v22  ;;  %581 = vmatpush3.bf16.msra.mxu1 %v637_v47 }
  0x50   :  { %582 = vmatprep.subr.bf16.mxu1 %v638_v48 }
  0x52   :  { %208 = vmatpush1.bf16.msra.mxu0 %v624_v24 }
  0x53   :  { %209 = vmatprep.subr.bf16.mxu0 %v625_v25  ;;  %583 = vmatpush3.bf16.msra.mxu1 %v639_v49 }
  0x54   :  { %584 = vmatprep.subr.bf16.mxu1 %v640_v50 }
  0x56   :  { %210 = vmatpush1.bf16.msra.mxu0 %v627_v26 }
  0x57   :  { %585 = vmatpush3.bf16.msra.mxu1 %v641_v51 }
  0x58   :  { %586 = vmatprep.subr.bf16.mxu1 %v642_v52 }
  0x5b   :  { %587 = vmatpush3.bf16.msra.mxu1 %v643_v53 }
  0xc5   :  { %v63_v7 = vpop.xlane.xlu0 %62 }
  0xc6   :  { %v67_v8 = vmul.f32 0.0078125, %v63_v7 }
  0xc8   :  { %v69_v9 = vsub.f32 %v60_v0, %v67_v8 }
  0xc9   :  { %v65_v10 = vpop.xlane.xlu0 %64 }
  0xca   :  { %v68_v11 = vmul.f32 0.0078125, %v65_v10  ;;  %v71_v12 = vmul.f32 %v69_v9, %v69_v9 }
  0xcc   :  { %v70_v13 = vsub.f32 %v61_v1, %v68_v11  ;;  %73 = vadd.xlane.f32.xlu1 %v71_v12 }
  0xce   :  { %v72_v14 = vmul.f32 %v70_v13, %v70_v13 }
  0xd0   :  { %75 = vadd.xlane.f32.xlu1 %v72_v14 }
 0x159   :  { %v74_v27 = vpop.xlane.xlu1 %73 }
 0x15a   :  { %v77_v28 = vmul.f32 0.0078125, %v74_v27 }
 0x15c   :  { %v79_v29 = vadd.f32 1e-05, %v77_v28 }
 0x15d   :  { %v76_v30 = vpop.xlane.xlu1 %75 }
 0x15e   :  { %v78_v31 = vmul.f32 0.0078125, %v76_v30  ;;  %644 = vrsqrt.f32 %v79_v29 }
 0x160   :  { %v80_v32 = vadd.f32 1e-05, %v78_v31 }
 0x162   :  { %646 = vrsqrt.f32 %v80_v32 }
 0x168   :  { %v645_v33 = vpop.eup %644 }
 0x169   :  { %v83_v35 = vmul.f32 %v645_v33, %v69_v9 }
 0x16c   :  { %v647_v34 = vpop.eup %646 }
 0x16d   :  { %v84_v36 = vmul.f32 %v647_v34, %v70_v13 }
 0x16f   :  { %v87_v37 = vpack.c.bf16 %v84_v36, %v83_v35 }
 0x171   :  { %228 = vmatmul.mubr.bf16.vlgmr.msra.gmra.mrb[0].mxu0 %v87_v37 }
 0x244   :  { %v229_v61 = vpop.f32.mrb[0].mxu0 }
 0x245   :  { %v845_v62 = vadd.f32 %v229_v61, %v108_v59  ;;  %v231_v63 = vpop.f32.mrb[1].mxu0 }
 0x246   :  { %v847_v0 = vadd.f32 %v231_v63, %v112_v60  ;;  %v233_v1 = vpop.f32.mrb[2].mxu0 }
 0x247   :  { %v850_v2 = vmul.f32 0.70710677, %v845_v62  ;;  %v852_v3 = vadd.f32 %v233_v1, %v108_v59  ;;  %v235_v4 = vpop.f32.mrb[3].mxu0 }
 0x248   :  { %v855_v5 = vmul.f32 0.70710677, %v847_v0  ;;  %v857_v6 = vadd.f32 %v235_v4, %v112_v60 }
 0x249   :  { %v254_v7 = vand.u32 2147483647, %v850_v2  ;;  %v861_v8 = vmul.f32 0.70710677, %v852_v3  ;;  %vm246_vm0 = vcmp.ge.f32.partialorder %v850_v2, 0.0 }
 0x24a   :  { %v255_v9 = vand.u32 2147483647, %v855_v5  ;;  %v866_v13 = vmul.f32 0.70710677, %v857_v6  ;;  %vm247_vm1 = vcmp.ge.f32.partialorder %v855_v5, 0.0 }
 0x24b   :  { %v258_v10 = vmul.f32 0.3275911, %v254_v7  ;;  %v256_v11 = vand.u32 2147483647, %v861_v8  ;;  %v306_v21 = vsub.f32 0.0, %v254_v7  ;;  %vm248_vm2 = vcmp.ge.f32.partialorder %v861_v8, 0.0 }
 0x24c   :  { %v259_v12 = vmul.f32 0.3275911, %v255_v9  ;;  %v257_v17 = vand.u32 2147483647, %v866_v13  ;;  %v307_v22 = vsub.f32 0.0, %v255_v9  ;;  %vm249_vm3 = vcmp.ge.f32.partialorder %v866_v13, 0.0 }
 0x24d   :  { %v262_v14 = vadd.f32 1.0, %v258_v10  ;;  %v260_v15 = vmul.f32 0.3275911, %v256_v11  ;;  %v310_v24 = vmul.f32 %v306_v21, %v254_v7  ;;  %v308_v25 = vsub.f32 0.0, %v256_v11 }
 0x24e   :  { %v263_v16 = vadd.f32 1.0, %v259_v12  ;;  %v261_v19 = vmul.f32 0.3275911, %v257_v17  ;;  %v311_v28 = vmul.f32 %v307_v22, %v255_v9  ;;  %v309_v29 = vsub.f32 0.0, %v257_v17 }
 0x24f   :  { %648 = vrcp.f32 %v262_v14  ;;  %v264_v18 = vadd.f32 1.0, %v260_v15  ;;  %v314_v33 = vmul.f32 1.442695, %v310_v24  ;;  %v312_v34 = vmul.f32 %v308_v25, %v256_v11 }
 0x250   :  { %650 = vrcp.f32 %v263_v16  ;;  %v265_v20 = vadd.f32 1.0, %v261_v19  ;;  %v316_v37 = vmul.f32 1.442695, %v311_v28  ;;  %v313_v40 = vmul.f32 %v309_v29, %v257_v17 }
 0x251   :  { %652 = vrcp.f32 %v264_v18  ;;  %v318_v45 = vmul.f32 1.442695, %v312_v34  ;;  %v766_v22 = vmov -1.0   ;;  %v241_v13 = vmul.f32 0.5, %v857_v6 }
 0x252   :  { %654 = vrcp.f32 %v265_v20  ;;  %v320_v50 = vmul.f32 1.442695, %v313_v40  ;;  %v250_v24 = vsel %vm246_vm0, 1.0, %v766_v22  ;;  %v251_v2 = vsel %vm247_vm1, 1.0, %v766_v22 }
 0x253   :  { %656 = vpow2.f32 %v314_v33  ;;  %v252_v33 = vsel %vm248_vm2, 1.0, %v766_v22 }
 0x254   :  { %658 = vpow2.f32 %v316_v37  ;;  %v240_v37 = vmul.f32 0.5, %v852_v3  ;;  %v555_v3 = vld [vmem:[%s898_s3 + $0x2] ss:$0 sm:$0xff] }
 0x255   :  { %660 = vpow2.f32 %v318_v45 }
 0x256   :  { %662 = vpow2.f32 %v320_v50 }
 0x259   :  { %v649_v23 = vpop.eup %648 }
 0x25a   :  { %v651_v26 = vpop.eup %650  ;;  %v270_v27 = vmul.f32 1.0614054, %v649_v23 }
 0x25b   :  { %v271_v30 = vmul.f32 1.0614054, %v651_v26  ;;  %v653_v32 = vpop.eup %652 }
 0x25c   :  { %v274_v31 = vadd.f32 -1.4531521, %v270_v27  ;;  %v272_v38 = vmul.f32 1.0614054, %v653_v32  ;;  %v655_v39 = vpop.eup %654 }
 0x25d   :  { %v275_v35 = vadd.f32 -1.4531521, %v271_v30  ;;  %v273_v44 = vmul.f32 1.0614054, %v655_v39  ;;  %v657_v10 = vpop.eup %656 }
 0x25e   :  { %v278_v36 = vmul.f32 %v649_v23, %v274_v31  ;;  %v276_v43 = vadd.f32 -1.4531521, %v272_v38  ;;  %v659_v12 = vpop.eup %658 }
 0x25f   :  { %v279_v41 = vmul.f32 %v651_v26, %v275_v35  ;;  %v277_v49 = vadd.f32 -1.4531521, %v273_v44  ;;  %v661_v21 = vpop.eup %660  ;;  %v238_v35 = vmul.f32 0.5, %v845_v62 }
 0x260   :  { %v282_v42 = vadd.f32 1.4214138, %v278_v36  ;;  %v280_v48 = vmul.f32 %v653_v32, %v276_v43  ;;  %v663_v28 = vpop.eup %662  ;;  %v253_v36 = vsel %vm249_vm3, 1.0, %v766_v22 }
 0x261   :  { %v283_v46 = vadd.f32 1.4214138, %v279_v41  ;;  %v281_v54 = vmul.f32 %v655_v39, %v277_v49 }
 0x262   :  { %v286_v47 = vmul.f32 %v649_v23, %v282_v42  ;;  %v284_v53 = vadd.f32 1.4214138, %v280_v48 }
 0x263   :  { %v287_v51 = vmul.f32 %v651_v26, %v283_v46  ;;  %v285_v58 = vadd.f32 1.4214138, %v281_v54 }
 0x264   :  { %v290_v52 = vadd.f32 -0.28449672, %v286_v47  ;;  %v288_v57 = vmul.f32 %v653_v32, %v284_v53 }
 0x265   :  { %v291_v55 = vadd.f32 -0.28449672, %v287_v51  ;;  %v289_v63 = vmul.f32 %v655_v39, %v285_v58 }
 0x266   :  { %v294_v56 = vmul.f32 %v649_v23, %v290_v52  ;;  %v292_v61 = vadd.f32 -0.28449672, %v288_v57 }
 0x267   :  { %v295_v59 = vmul.f32 %v651_v26, %v291_v55  ;;  %v293_v9 = vadd.f32 -0.28449672, %v289_v63 }
 0x268   :  { %v298_v60 = vadd.f32 0.2548296, %v294_v56  ;;  %v296_v7 = vmul.f32 %v653_v32, %v292_v61 }
 0x269   :  { %v299_v1 = vadd.f32 0.2548296, %v295_v59  ;;  %v297_v16 = vmul.f32 %v655_v39, %v293_v9 }
 0x26a   :  { %v302_v4 = vmul.f32 %v649_v23, %v298_v60  ;;  %v300_v15 = vadd.f32 0.2548296, %v296_v7 }
 0x26b   :  { %v303_v11 = vmul.f32 %v651_v26, %v299_v1  ;;  %v301_v20 = vadd.f32 0.2548296, %v297_v16 }
 0x26c   :  { %v322_v14 = vmul.f32 %v657_v10, %v302_v4  ;;  %v304_v19 = vmul.f32 %v653_v32, %v300_v15 }
 0x26d   :  { %v323_v17 = vmul.f32 %v659_v12, %v303_v11  ;;  %v305_v27 = vmul.f32 %v655_v39, %v301_v20  ;;  %v239_v39 = vmul.f32 0.5, %v847_v0 }
 0x26e   :  { %v326_v18 = vsub.f32 1.0, %v322_v14  ;;  %v324_v26 = vmul.f32 %v661_v21, %v304_v19 }
 0x26f   :  { %v327_v23 = vsub.f32 1.0, %v323_v17  ;;  %v325_v30 = vmul.f32 %v663_v28, %v305_v27 }
 0x270   :  { %v330_v25 = vmul.f32 %v326_v18, %v250_v24  ;;  %v328_v29 = vsub.f32 1.0, %v324_v26 }
 0x271   :  { %v331_v31 = vmul.f32 %v327_v23, %v251_v2  ;;  %v329_v34 = vsub.f32 1.0, %v325_v30 }
 0x272   :  { %v334_v5 = vadd.f32 1.0, %v330_v25  ;;  %v332_v32 = vmul.f32 %v328_v29, %v252_v33 }
 0x273   :  { %v333_v8 = vmul.f32 %v329_v34, %v253_v36  ;;  %v335_v40 = vadd.f32 1.0, %v331_v31 }
 0x274   :  { %v336_v38 = vadd.f32 1.0, %v332_v32  ;;  %v338_v41 = vmul.f32 %v334_v5, %v238_v35 }
 0x275   :  { %v337_v43 = vadd.f32 1.0, %v333_v8  ;;  %v339_v44 = vmul.f32 %v335_v40, %v239_v39 }
 0x276   :  { %v340_v42 = vmul.f32 %v336_v38, %v240_v37 }
 0x277   :  { %v341_v45 = vmul.f32 %v337_v43, %v241_v13 }
 0x278   :  { %v342_v46 = vpack.c.bf16 %v340_v42, %v338_v41 }
 0x279   :  { %v343_v47 = vpack.c.bf16 %v341_v45, %v339_v44 }
 0x27b   :  { %510 = vmatprep.mubr.bf16.mxu1 %v343_v47 }
 0x27c   :  { %511 = vmatmul.mubr.bf16.vlgmr.msra.gmra.mrb[0].mxu1 %v342_v46 }
 0x34f   :  { %v588_v62 = vpop.f32.mrb[0].mxu1 }
 0x350   :  { %v589_v48 = vpop.f32.mrb[1].mxu1 }
 0x351   :  { %v590_v49 = vadd.f32 %v589_v48, %v588_v62  ;;  %v591_v50 = vpop.f32.mrb[2].mxu1 }
 0x352   :  { %v592_v0 = vpop.f32.mrb[3].mxu1 }
 0x353   :  { %v513_v51 = vadd.f32 %v590_v49, %v555_v3  ;;  %v593_v6 = vadd.f32 %v592_v0, %v591_v50 }
 0x355   :  { %519 = vst [vmem:[#allocation8] sm:$0xff] %v513_v51  ;;  %v516_v52 = vadd.f32 %v593_v6, %v555_v3 }
 0x357   :  { %520 = vst [vmem:[#allocation8 + $0x8] sm:$0xff] %v516_v52 }
 0x358   :  { %741 = shalt.err (!%p738_p0)
}
 0x359   :  { %s742_s10 = scalar_lea.hbm %s899_s4, 256 }
 0x35a   :  { %p743_p1 = scmp.ne.s32.totalorder %s899_s4, %s742_s10  ;;  %p746_p2 = scmp.lt.u32.totalorder %s742_s10, %s899_s4 }
 0x35c   :  { %p748_p3 = pnand %p746_p2, %p743_p1 }
 0x35e   :  { %751 = shalt.err (!%p748_p3)
}
 0x35f   :  { %532 = dma.vmem_to_hbm [thread:$0]  %s527_s7, 256, %s899_s4, [#allocation4], %s760_s27, %s760_s27, %s761_s28  }
 0x360   :  { %756 = dma.done.wait [#allocation4], 256  }
 0x361   :  { %757 = vsyncadd [#allocation4], 4294967040 }
 0x362   :  { %536 = vsyncpa [#allocation3], 1 }
 0x363   :  { %537 = vsyncpa [#allocation6], 1 }
 0x364   :  { %538 = vsyncpa [#allocation4], 1 }

</bundles_post_ra>
